<compile_context>
chip_gen: v7x
topology: tpu7x:2x2x1
jax: 0.10.0
libtpu: 0.0.40
codegen_flags: <defaults>
</compile_context>

<pallas_src>
import functools

import jax
import jax.numpy as jnp
from jax import lax
from jax.experimental import pallas as pl
from jax.experimental.pallas import tpu as pltpu


_FUSED_SAMPLE_BYTES = 4 * 1024 * 1024   # take the fused path when a sample <= this
_FUSED_BLOCK_BYTES = 4 * 1024 * 1024    # pack Nb samples per grid step up to this
_STREAM_BLOCK_BYTES = 4 * 1024 * 1024   # streaming path HW-tile byte target
_STREAM_MAX_LANES = 8192                # bounds the unrolled lane-tile fold in pass 1
_VMEM_LIMIT_BYTES = 48 * 1024 * 1024    # < v7x 64 MiB physical; headroom on v5e/v6e


def _largest_divisor_leq(n, cap):
    """Largest divisor of n that is <= cap (so sample-packed blocks never go OOB)."""
    cap = max(1, min(n, cap))
    for d in range(cap, 0, -1):
        if n % d == 0:
            return d
    return 1


# ----------------------------------------------------------------------------
# Fused single-pass path (sample fits in VMEM): 1 HBM read + 1 HBM write.
# ----------------------------------------------------------------------------
def _fused_kernel(x_ref, w_ref, b_ref, o_ref, *, inv_n, eps):
    """Per-sample mean/var (centered, f32) + per-row affine, all in one pass.

    x_ref/o_ref: (Nb, R, Ccol).  w_ref/b_ref: (R, 1); each row maps to a channel
    (rows repeat the channel value when the sample is viewed lane-dense).
    """
    xf = x_ref[...].astype(jnp.float32)                     # (Nb, R, Ccol)
    s1 = jnp.sum(xf, axis=2, keepdims=True)                 # lane reduce
    mean = jnp.sum(s1, axis=1, keepdims=True) * inv_n       # (Nb, 1, 1)
    xc = xf - mean
    v1 = jnp.sum(xc * xc, axis=2, keepdims=True)
    var = jnp.sum(v1, axis=1, keepdims=True) * inv_n        # (Nb, 1, 1)
    rstd = lax.rsqrt(var + eps)
    w = w_ref[...].astype(jnp.float32)[None]                # (1, R, 1)
    b = b_ref[...].astype(jnp.float32)[None]                # (1, R, 1)
    o_ref[...] = (xc * (rstd * w) + b).astype(o_ref.dtype)


def _layernorm_fused(x, weight, bias, eps):
    N, C, H, W = x.shape
    HW = H * W
    L = C * HW
    inv_n = 1.0 / L
    itemsize = jnp.dtype(x.dtype).itemsize

    wv = weight.reshape(C).astype(jnp.float32)
    bv = bias.reshape(C).astype(jnp.float32)
    if HW % 128 == 0:
        # Lane/sublane-dense sample view: full (8,128) vreg packing even for
        # tiny C and unmasked lane-dense stores.  Channel c owns rows
        # [c*HW/128, (c+1)*HW/128), so per-row weight/bias is a cheap repeat.
        R, Ccol = L // 128, 128
        rep = HW // 128
        w_rows = jnp.repeat(wv, rep).reshape(R, 1)
        b_rows = jnp.repeat(bv, rep).reshape(R, 1)
    else:
        R, Ccol = C, HW
        w_rows = wv.reshape(R, 1)
        b_rows = bv.reshape(R, 1)

    xr = x.reshape(N, R, Ccol)                 # free reshape (trailing dims only)

    nb_cap = max(1, _FUSED_BLOCK_BYTES // max(1, L * itemsize))
    Nb = _largest_divisor_leq(N, nb_cap)       # divisor => no ragged sample blocks

    out = pl.pallas_call(
        functools.partial(_fused_kernel, inv_n=inv_n, eps=eps),
        out_shape=jax.ShapeDtypeStruct((N, R, Ccol), x.dtype),
        grid_spec=pltpu.PrefetchScalarGridSpec(
            num_scalar_prefetch=0,
            grid=(N // Nb,),
            in_specs=[
                pl.BlockSpec((Nb, R, Ccol), lambda i: (i, 0, 0)),
                pl.BlockSpec((R, 1), lambda i: (0, 0)),
                pl.BlockSpec((R, 1), lambda i: (0, 0)),
            ],
            out_specs=pl.BlockSpec((Nb, R, Ccol), lambda i: (i, 0, 0)),
        ),
        compiler_params=pltpu.CompilerParams(
            dimension_semantics=("parallel",),
            vmem_limit_bytes=_VMEM_LIMIT_BYTES,
        ),
    )(xr, w_rows, b_rows)
    return out.reshape(N, C, H, W)


# ----------------------------------------------------------------------------
# Streaming two-pass path (sample does not fit): 2 HBM reads + 1 HBM write,
# no external pad/slice passes.
# ----------------------------------------------------------------------------
def _stats_kernel(x_ref, sums_ref, s_acc, q_acc, *, hw, t):
    """Pass 1: per-sample (sum, sum_sq) using (C, 128) per-lane accumulators."""
    j = pl.program_id(1)

    @pl.when(j == 0)
    def _():
        s_acc[...] = jnp.zeros_like(s_acc)
        q_acc[...] = jnp.zeros_like(q_acc)

    xf = x_ref[...].astype(jnp.float32)                      # (C, T)
    if hw % t != 0:
        # Ragged tail: columns beyond HW hold unspecified data; zero them so
        # they contribute nothing (mean uses the true element count).
        col = j * t + lax.broadcasted_iota(jnp.int32, xf.shape, 1)
        xf = jnp.where(col < hw, xf, 0.0)

    # Fold the T lanes into 128 with pure VALU adds over lane-tile slices
    # (layout-preserving 128-wide slices); no per-tile cross-lane XLU reduce
    # and no 1-element scalar read-modify-write.
    ps = xf[:, 0:128]
    pq = ps * ps
    for k in range(1, t // 128):
        xk = xf[:, k * 128:(k + 1) * 128]
        ps = ps + xk
        pq = pq + xk * xk
    s_acc[...] += ps
    q_acc[...] += pq

    @pl.when(j == pl.num_programs(1) - 1)
    def _():
        sums_ref[0:1, :] = jnp.broadcast_to(jnp.sum(s_acc[...]), (1, 128))
        sums_ref[1:2, :] = jnp.broadcast_to(jnp.sum(q_acc[...]), (1, 128))


def _apply_kernel(x_ref, scale_ref, shift_ref, o_ref):
    """Pass 2: out = x * scale[c] + shift[c] with the affine pre-folded per sample."""
    xf = x_ref[...].astype(jnp.float32)                      # (C, T)
    o_ref[...] = (xf * scale_ref[...] + shift_ref[...]).astype(o_ref.dtype)


def _layernorm_streaming(x, weight, bias, eps, tile_lanes=None):
    N, C, H, W = x.shape
    HW = H * W
    L = C * HW
    inv_n = 1.0 / L
    itemsize = jnp.dtype(x.dtype).itemsize

    if tile_lanes is None:
        t = (_STREAM_BLOCK_BYTES // max(1, C * itemsize)) // 128 * 128
        t = max(128, min(t, _STREAM_MAX_LANES))
    else:
        t = tile_lanes
    t = min(t, pl.cdiv(HW, 128) * 128)
    nt = pl.cdiv(HW, t)

    x3 = x.reshape(N, C, HW)                 # free reshape; NO pad, NO slice

    # Pass 1: per-sample raw (sum, sum_sq).
    sums = pl.pallas_call(
        functools.partial(_stats_kernel, hw=HW, t=t),
        out_shape=jax.ShapeDtypeStruct((N, 2, 128), jnp.float32),
        grid_spec=pltpu.PrefetchScalarGridSpec(
            num_scalar_prefetch=0,
            grid=(N, nt),
            in_specs=[pl.BlockSpec((None, C, t), lambda i, j: (i, 0, j))],
            out_specs=pl.BlockSpec((None, 2, 128), lambda i, j: (i, 0, 0)),
            scratch_shapes=[
                pltpu.VMEM((C, 128), jnp.float32),
                pltpu.VMEM((C, 128), jnp.float32),
            ],
        ),
        compiler_params=pltpu.CompilerParams(
            dimension_semantics=("parallel", "arbitrary"),
            vmem_limit_bytes=_VMEM_LIMIT_BYTES,
        ),
    )(x3)

    # Tiny XLA epilogue on (N,)/(N,C)-sized arrays (negligible HBM traffic):
    # fold (mean, rstd) and the per-channel affine into per-(sample, channel)
    # scale/shift so pass 2 streams only x/out blocks.
    s = sums[:, 0, 0]
    q = sums[:, 1, 0]
    mean = s * inv_n
    var = jnp.maximum(q * inv_n - mean * mean, 0.0)   # guard f32 cancellation
    rstd = lax.rsqrt(var + eps)
    wv = weight.reshape(C).astype(jnp.float32)
    bv = bias.reshape(C).astype(jnp.float32)
    scale = rstd[:, None] * wv[None, :]               # (N, C)
    shift = bv[None, :] - mean[:, None] * scale
    scale = scale.reshape(N, C, 1)
    shift = shift.reshape(N, C, 1)

    # Pass 2: streaming normalize + affine.  The ragged last block's
    # out-of-bounds columns are dropped by Pallas on writeback.
    out3 = pl.pallas_call(
        _apply_kernel,
        out_shape=jax.ShapeDtypeStruct((N, C, HW), x.dtype),
        grid_spec=pltpu.PrefetchScalarGridSpec(
            num_scalar_prefetch=0,
            grid=(N, nt),
            in_specs=[
                pl.BlockSpec((None, C, t), lambda i, j: (i, 0, j)),
                pl.BlockSpec((None, C, 1), lambda i, j: (i, 0, 0)),
                pl.BlockSpec((None, C, 1), lambda i, j: (i, 0, 0)),
            ],
            out_specs=pl.BlockSpec((None, C, t), lambda i, j: (i, 0, j)),
        ),
        compiler_params=pltpu.CompilerParams(
            dimension_semantics=("parallel", "parallel"),
            vmem_limit_bytes=_VMEM_LIMIT_BYTES,
        ),
    )(x3, scale, shift)
    return out3.reshape(N, C, H, W)


def layernorm_p(x, weight, bias, eps=1e-5):
    """LayerNormP forward.  x: (N,C,H,W); weight/bias: (1,C,1,1).

    Note: `eps` is baked into the kernel, so mark it static under jax.jit.
    """
    N, C, H, W = x.shape
    sample_bytes = C * H * W * jnp.dtype(x.dtype).itemsize
    if sample_bytes <= _FUSED_SAMPLE_BYTES:
        return _layernorm_fused(x, weight, bias, eps)
    return _layernorm_streaming(x, weight, bias, eps)


def _reference(x, weight, bias, eps=1e-5):
    """Pure-JAX reference mirroring F.layer_norm over (1,2,3) + per-channel affine."""
    xf = x.astype(jnp.float32)
    mean = jnp.mean(xf, axis=(1, 2, 3), keepdims=True)
    var = jnp.mean((xf - mean) ** 2, axis=(1, 2, 3), keepdims=True)
    xhat = (xf - mean) / jnp.sqrt(var + eps)
    return (xhat * weight + bias).astype(x.dtype)


if __name__ == "__main__":
    root = jax.random.PRNGKey(0)
    kx, kw, kb, kx2, kx3 = jax.random.split(root, 5)

    # --- Main test: module-sized shape -> fused single-pass, lane-dense path. ---
    N, C, H, W = 2, 4, 16, 16
    x = jax.random.normal(kx, (N, C, H, W), dtype=jnp.float32)
    # nn.Parameter init is ones/zeros; perturb deterministically so the affine
    # path is actually exercised.
    weight = 1.0 + 0.1 * jax.random.normal(kw, (1, C, 1, 1), dtype=jnp.float32)
    bias = 0.1 * jax.random.normal(kb, (1, C, 1, 1), dtype=jnp.float32)

    fwd = jax.jit(layernorm_p, static_argnames=("eps",))
    out = jax.block_until_ready(fwd(x, weight, bias, eps=1e-5))
    ref = _reference(x, weight, bias, eps=1e-5)
    assert out.shape == (N, C, H, W)
    assert jnp.allclose(out, ref, atol=1e-4, rtol=1e-4), "fused path mismatch"

    # --- Streaming two-pass path on device (tile forced so HW spans 2 tiles). ---
    xs = jax.random.normal(kx2, (2, 8, 16, 16), dtype=jnp.float32)   # HW=256
    ws = 1.0 + 0.1 * jax.random.normal(kw, (1, 8, 1, 1), dtype=jnp.float32)
    bs = 0.1 * jax.random.normal(kb, (1, 8, 1, 1), dtype=jnp.float32)
    outs = jax.block_until_ready(
        _layernorm_streaming(xs, ws, bs, 1e-5, tile_lanes=128))
    refs = _reference(xs, ws, bs, eps=1e-5)
    assert jnp.allclose(outs, refs, atol=1e-4, rtol=1e-4), "streaming path mismatch"

    # --- Ragged-tail masking logic check via the TPU interpreter (HW=200). ---
    xr = jax.random.normal(kx3, (2, 8, 10, 20), dtype=jnp.float32)
    with pltpu.force_tpu_interpret_mode():
        outr = _layernorm_streaming(xr, ws, bs, 1e-5, tile_lanes=128)
    outr = jax.block_until_ready(outr)
    refr = _reference(xr, ws, bs, eps=1e-5)
    assert jnp.allclose(outr, refr, atol=1e-4, rtol=1e-4), "ragged-tail mismatch"

    print("KERNEL_OK")
</pallas_src>

<mosaic_0001>
module attributes {stable_mosaic.version = 11 : i64} {
  func.func @_fused_kernel(%arg0: i32, %arg1: memref<2x8x128xf32, #tpu.memory_space<vmem>>, %arg2: memref<8x1xf32, #tpu.memory_space<vmem>>, %arg3: memref<8x1xf32, #tpu.memory_space<vmem>>, %arg4: memref<2x8x128xf32, #tpu.memory_space<vmem>>) attributes {dimension_semantics = [#tpu.dimension_semantics<parallel>], iteration_bounds = array<i64: 1>, scalar_prefetch = 0 : i64, scratch_operands = 0 : i64, tpu.core_type = #tpu.core_type<tc>, window_params = [{transform_indices = @transform_0, window_bounds = array<i64: 2, 8, 128>}, {pipeline_mode = #tpu.pipeline_mode<synchronous>, transform_indices = @transform_1, window_bounds = array<i64: 8, 1>}, {pipeline_mode = #tpu.pipeline_mode<synchronous>, transform_indices = @transform_2, window_bounds = array<i64: 8, 1>}, {transform_indices = @transform_3, window_bounds = array<i64: 2, 8, 128>}]} {
    %c0 = arith.constant 0 : index
    %c0_0 = arith.constant 0 : index
    %c0_1 = arith.constant 0 : index
    %0 = vector.load %arg1[%c0, %c0_0, %c0_1] : memref<2x8x128xf32, #tpu.memory_space<vmem>>, vector<2x8x128xf32>
    %cst = arith.constant dense<0.000000e+00> : vector<2x8xf32>
    %1 = vector.multi_reduction <add>, %0, %cst [2] : vector<2x8x128xf32> to vector<2x8xf32>
    %2 = vector.shape_cast %1 : vector<2x8xf32> to vector<2x8x1xf32>
    %cst_2 = arith.constant dense<0.000000e+00> : vector<2x1xf32>
    %3 = vector.multi_reduction <add>, %2, %cst_2 [1] : vector<2x8x1xf32> to vector<2x1xf32>
    %4 = vector.shape_cast %3 : vector<2x1xf32> to vector<2x1x1xf32>
    %cst_3 = arith.constant 9.765625E-4 : f32
    %5 = vector.broadcast %cst_3 : f32 to vector<2x1x1xf32>
    %6 = arith.mulf %4, %5 : vector<2x1x1xf32>
    %7 = vector.broadcast %6 : vector<2x1x1xf32> to vector<2x8x128xf32>
    %8 = arith.subf %0, %7 : vector<2x8x128xf32>
    %9 = arith.mulf %8, %8 : vector<2x8x128xf32>
    %cst_4 = arith.constant dense<0.000000e+00> : vector<2x8xf32>
    %10 = vector.multi_reduction <add>, %9, %cst_4 [2] : vector<2x8x128xf32> to vector<2x8xf32>
    %11 = vector.shape_cast %10 : vector<2x8xf32> to vector<2x8x1xf32>
    %cst_5 = arith.constant dense<0.000000e+00> : vector<2x1xf32>
    %12 = vector.multi_reduction <add>, %11, %cst_5 [1] : vector<2x8x1xf32> to vector<2x1xf32>
    %13 = vector.shape_cast %12 : vector<2x1xf32> to vector<2x1x1xf32>
    %cst_6 = arith.constant 9.765625E-4 : f32
    %14 = vector.broadcast %cst_6 : f32 to vector<2x1x1xf32>
    %15 = arith.mulf %13, %14 : vector<2x1x1xf32>
    %cst_7 = arith.constant 9.99999974E-6 : f32
    %16 = vector.broadcast %cst_7 : f32 to vector<2x1x1xf32>
    %17 = arith.addf %15, %16 : vector<2x1x1xf32>
    %18 = math.rsqrt %17 : vector<2x1x1xf32>
    %c0_8 = arith.constant 0 : index
    %c0_9 = arith.constant 0 : index
    %19 = vector.load %arg2[%c0_8, %c0_9] : memref<8x1xf32, #tpu.memory_space<vmem>>, vector<8x1xf32>
    %20 = vector.shape_cast %19 : vector<8x1xf32> to vector<1x8x1xf32>
    %c0_10 = arith.constant 0 : index
    %c0_11 = arith.constant 0 : index
    %21 = vector.load %arg3[%c0_10, %c0_11] : memref<8x1xf32, #tpu.memory_space<vmem>>, vector<8x1xf32>
    %22 = vector.shape_cast %21 : vector<8x1xf32> to vector<1x8x1xf32>
    %23 = vector.broadcast %18 : vector<2x1x1xf32> to vector<2x8x1xf32>
    %24 = vector.broadcast %20 : vector<1x8x1xf32> to vector<2x8x1xf32>
    %25 = arith.mulf %23, %24 : vector<2x8x1xf32>
    %26 = vector.broadcast %25 : vector<2x8x1xf32> to vector<2x8x128xf32>
    %27 = arith.mulf %8, %26 : vector<2x8x128xf32>
    %28 = vector.broadcast %22 : vector<1x8x1xf32> to vector<2x8x128xf32>
    %29 = arith.addf %27, %28 : vector<2x8x128xf32>
    %c0_12 = arith.constant 0 : index
    %c0_13 = arith.constant 0 : index
    %c0_14 = arith.constant 0 : index
    %30 = vector.load %arg4[%c0_12, %c0_13, %c0_14] : memref<2x8x128xf32, #tpu.memory_space<vmem>>, vector<2x8x128xf32>
    tpu.vector_store %arg4[%c0_12, %c0_13, %c0_14], %29 {strides = array<i32>} : memref<2x8x128xf32, #tpu.memory_space<vmem>>, vector<2x8x128xf32>,
    return
  }
  func.func @transform_0(%arg0: i32) -> (i32, i32, i32) {
    %c0_i32 = arith.constant 0 : i32
    %c0_i32_0 = arith.constant 0 : i32
    %c0_i32_1 = arith.constant 0 : i32
    return %arg0, %c0_i32, %c0_i32_0 : i32, i32, i32
  }
  func.func @transform_1(%arg0: i32) -> (i32, i32) {
    %c0_i32 = arith.constant 0 : i32
    %c0_i32_0 = arith.constant 0 : i32
    %c0_i32_1 = arith.constant 0 : i32
    return %c0_i32, %c0_i32_0 : i32, i32
  }
  func.func @transform_2(%arg0: i32) -> (i32, i32) {
    %c0_i32 = arith.constant 0 : i32
    %c0_i32_0 = arith.constant 0 : i32
    %c0_i32_1 = arith.constant 0 : i32
    return %c0_i32, %c0_i32_0 : i32, i32
  }
  func.func @transform_3(%arg0: i32) -> (i32, i32, i32) {
    %c0_i32 = arith.constant 0 : i32
    %c0_i32_0 = arith.constant 0 : i32
    %c0_i32_1 = arith.constant 0 : i32
    return %arg0, %c0_i32, %c0_i32_0 : i32, i32, i32
  }
}

</mosaic_0001>

<bundles_post_ra>
// kernel: layernorm_p.1
= control target key start
LH: loop header
LB: loop body
LE: loop exit
PB: predicated region body
PF: predicated region fallthrough
CT: control target
= control target key end

     0   :  { %v96_v22 = vmov 0   ;;  %s135_s0 = inlined_call_operand.vmem [shape: f32[2,8,128], index: 0, kind: input, shape index: {}]   ;;  %s136_s1 = inlined_call_operand.vmem [shape: f32[8,1], index: 1, kind: input, shape index: {}]   ;;  %s137_s2 = inlined_call_operand.vmem [shape: f32[8,1], index: 2, kind: input, shape index: {}]   ;;  %s138_s3 = inlined_call_operand.vmem [shape: f32[2,8,128], index: 3, kind: output, shape index: {}]  }
   0x1   :  { %v14_v0 = vld [vmem:[%s135_s0] sm:$0xff]  ;;  %v15_v1 = vld [vmem:[%s135_s0 + $0x8] sm:$0xff]  ;;  %90 = vset.pattern.permute.xlu0 %v96_v22  ;;  %91 = vset.pattern.permute.xlu1 %v96_v22 }
   0x2   :  { %16 = vadd.xlane.f32.xlu0 %v14_v0  ;;  %v60_v41 = vld [vmem:[%s136_s1] sm:$0xff] }
   0x3   :  { %v61_v46 = vld [vmem:[%s137_s2] sm:$0xff] }
   0x6   :  { %18 = vadd.xlane.f32.xlu0 %v15_v1 }
  0x8f   :  { %v17_v2 = vpop.xlane.xlu0 %16 }
  0x90   :  { %v20_v3 = vrot.slane %v17_v2, 4 }
  0x92   :  { %v21_v4 = vadd.f32 %v20_v3, %v17_v2 }
  0x93   :  { %v19_v5 = vpop.xlane.xlu0 %18 }
  0x94   :  { %v22_v6 = vrot.slane %v21_v4, 2  ;;  %v26_v7 = vrot.slane %v19_v5, 4 }
  0x96   :  { %v23_v8 = vadd.f32 %v22_v6, %v21_v4  ;;  %v27_v9 = vadd.f32 %v26_v7, %v19_v5 }
  0x98   :  { %v24_v10 = vrot.slane %v23_v8, 1  ;;  %v28_v11 = vrot.slane %v27_v9, 2 }
  0x9a   :  { %v29_v12 = vadd.f32 %v28_v11, %v27_v9  ;;  %v25_v13 = vadd.f32 %v24_v10, %v23_v8 }
  0x9c   :  { %v30_v14 = vrot.slane %v29_v12, 1  ;;  %v32_v15 = vmul.f32 0.0009765625, %v25_v13 }
  0x9e   :  { %v31_v16 = vadd.f32 %v30_v14, %v29_v12  ;;  %v34_v17 = vsub.f32 %v14_v0, %v32_v15 }
  0xa0   :  { %v36_v18 = vmul.f32 %v34_v17, %v34_v17  ;;  %v33_v19 = vmul.f32 0.0009765625, %v31_v16 }
  0xa2   :  { %38 = vadd.xlane.f32.xlu1 %v36_v18  ;;  %v35_v20 = vsub.f32 %v15_v1, %v33_v19 }
  0xa4   :  { %v37_v21 = vmul.f32 %v35_v20, %v35_v20 }
  0xa6   :  { %40 = vadd.xlane.f32.xlu1 %v37_v21 }
 0x12f   :  { %v39_v23 = vpop.xlane.xlu1 %38 }
 0x130   :  { %v42_v24 = vrot.slane %v39_v23, 4 }
 0x132   :  { %v43_v25 = vadd.f32 %v42_v24, %v39_v23 }
 0x133   :  { %v41_v26 = vpop.xlane.xlu1 %40 }
 0x134   :  { %v44_v27 = vrot.slane %v43_v25, 2  ;;  %v48_v28 = vrot.slane %v41_v26, 4 }
 0x136   :  { %v45_v29 = vadd.f32 %v44_v27, %v43_v25  ;;  %v49_v30 = vadd.f32 %v48_v28, %v41_v26 }
 0x138   :  { %v46_v31 = vrot.slane %v45_v29, 1  ;;  %v50_v32 = vrot.slane %v49_v30, 2 }
 0x13a   :  { %v47_v33 = vadd.f32 %v46_v31, %v45_v29  ;;  %v51_v34 = vadd.f32 %v50_v32, %v49_v30 }
 0x13c   :  { %v54_v35 = vmul.f32 0.0009765625, %v47_v33  ;;  %v52_v36 = vrot.slane %v51_v34, 1 }
 0x13e   :  { %v56_v37 = vadd.f32 1e-05, %v54_v35  ;;  %v53_v38 = vadd.f32 %v52_v36, %v51_v34 }
 0x140   :  { %92 = vrsqrt.f32 %v56_v37  ;;  %v55_v39 = vmul.f32 0.0009765625, %v53_v38 }
 0x142   :  { %v57_v40 = vadd.f32 1e-05, %v55_v39 }
 0x144   :  { %94 = vrsqrt.f32 %v57_v40 }
 0x14a   :  { %v93_v42 = vpop.eup %92 }
 0x14b   :  { %v62_v43 = vmul.f32 %v93_v42, %v60_v41 }
 0x14d   :  { %66 = vperm.xlu0 %90, %v62_v43  }
 0x14e   :  { %v95_v44 = vpop.eup %94 }
 0x14f   :  { %v63_v45 = vmul.f32 %v95_v44, %v60_v41 }
 0x151   :  { %71 = vperm.xlu1 %91, %v63_v45  }
 0x155   :  { %78 = vperm.xlu1 %91, %v61_v46  }
 0x1cc   :  { %v67_v47 = vpop.permute.xlu0 %66 }
 0x1cd   :  { %v74_v49 = vmul.f32 %v67_v47, %v34_v17 }
 0x1d0   :  { %v72_v48 = vpop.permute.xlu1 %71 }
 0x1d1   :  { %v75_v50 = vmul.f32 %v72_v48, %v35_v20 }
 0x1d4   :  { %v79_v51 = vpop.permute.xlu1 %78 }
 0x1d5   :  { %v81_v52 = vadd.f32 %v79_v51, %v74_v49  ;;  %v82_v53 = vadd.f32 %v79_v51, %v75_v50 }
 0x1d7   :  { %83 = vst [vmem:[%s138_s3] sm:$0xff] %v81_v52  ;;  %84 = vst [vmem:[%s138_s3 + $0x8] sm:$0xff] %v82_v53 }

</bundles_post_ra>
